<compile_context>
chip_gen: v7x
topology: tpu7x:2x2x1
jax: 0.10.0
libtpu: 0.0.40
codegen_flags: <defaults>
</compile_context>

<pallas_src>
from functools import partial

import numpy as np
import jax
import jax.numpy as jnp
from jax.experimental import pallas as pl
from jax.experimental.pallas import tpu as pltpu

_CompilerParams = getattr(pltpu, "CompilerParams", None) or getattr(
    pltpu, "TPUCompilerParams", None
)


def _round_up(x, m):
    return ((x + m - 1) // m) * m


def _pick_tm(m8, max_tm=512):
    """Largest multiple-of-8 divisor of m8 that is <= max_tm and leaves >= 2
    grid steps when m8 allows it (megacore / v7x 2-TC sharding); multiples of
    256 (full MXU rows on v6e/v7x) are preferred over merely larger tiles."""
    cap = min(max_tm, m8 if m8 <= 8 else max(8, (m8 // 2) // 8 * 8))
    best, best256 = 8, 0
    t = 8
    while t <= cap:
        if m8 % t == 0:
            best = t
            if t % 256 == 0:
                best256 = t
        t += 8
    return best256 or best


def _pick_tn(n_pad, k_pad, itemsize, budget=8 << 20):
    """Full-N weight block when small; otherwise the largest multiple of 128
    dividing n_pad that keeps one weight block within `budget` bytes."""
    if n_pad <= 128 or k_pad * n_pad * itemsize <= budget:
        return n_pad
    tn = max(128, min(n_pad, (budget // (k_pad * itemsize)) // 128 * 128))
    while n_pad % tn:
        tn -= 128
    return max(tn, 128)


def _spec(block_shape, index_map, single_buffer=False):
    """BlockSpec; grid-invariant operands get a single VMEM buffer when the
    running JAX exposes pl.Buffered (saves a duplicate weight buffer)."""
    if single_buffer and hasattr(pl, "Buffered"):
        try:
            return pl.BlockSpec(block_shape, index_map, pipeline_mode=pl.Buffered(1))
        except TypeError:  # older JAX without pipeline_mode
            pass
    return pl.BlockSpec(block_shape, index_map)


def _proj_kernel(x_ref, w_ref, b_ref, o_ref):
    # x:(tm,Kp) w:(Kp,tn) in compute dtype; b:(1,tn) f32; o:(tm,tn) out dtype.
    acc = jnp.dot(x_ref[...], w_ref[...], preferred_element_type=jnp.float32)
    o_ref[...] = (acc + b_ref[...]).astype(o_ref.dtype)


@partial(jax.jit, static_argnames=("patch_size", "compute_dtype", "out_dtype"))
def patch_embed_pallas(x, weight, bias, patch_size,
                       compute_dtype=jnp.bfloat16, out_dtype=None):
    """ViT patch embedding: x (B,C,H,W) -> (B, num_patches, embed_dim).

    weight: PyTorch nn.Linear layout (embed_dim, C*p*p); bias: (embed_dim,).

    Precision (documented, opt-in): activations and weights feed the MXU in
    `compute_dtype` (default bfloat16) with f32 accumulation and f32 bias add;
    the result is stored as `out_dtype` (default = compute_dtype).  Pass
    compute_dtype=jnp.float32 for exact f32 nn.Linear semantics.
    """
    B, C, H, W = x.shape
    p = patch_size
    hp, wp = H // p, W // p
    num_patches = hp * wp
    K = C * p * p
    N = weight.shape[0]
    if weight.shape[1] != K:
        raise ValueError(f"weight shape {weight.shape} != ({N}, {K})")
    M = B * num_patches
    out_dtype = compute_dtype if out_dtype is None else out_dtype
    in_b = np.dtype(compute_dtype).itemsize
    out_b = np.dtype(out_dtype).itemsize

    # --- glue (fused under jit): cast first so the patchify transpose moves
    #     half the bytes; then the PyTorch view/permute/view im2col. ---
    xb = x.astype(compute_dtype)
    xp = xb.reshape(B, C, hp, p, wp, p).transpose(0, 2, 4, 1, 3, 5).reshape(M, K)
    wt = weight.astype(compute_dtype).T                 # (K, N), rows = (c, ph, pw)
    bf = bias.astype(jnp.float32).reshape(1, N)

    # --- tiling: lane-dense 128-padded K/N, divisor-aligned row tile. ---
    K_pad = _round_up(K, 128)
    N_pad = _round_up(N, 128)
    M8 = _round_up(M, 8)
    tm = _pick_tm(M8)
    tn = _pick_tn(N_pad, K_pad, in_b)
    ni, nj = M8 // tm, N_pad // tn

    if (M8, K_pad) != (M, K):
        xp = jnp.pad(xp, ((0, M8 - M), (0, K_pad - K)))
    if (K_pad, N_pad) != (K, N):
        wt = jnp.pad(wt, ((0, K_pad - K), (0, N_pad - N)))
    if N_pad != N:
        bf = jnp.pad(bf, ((0, 0), (0, N_pad - N)))

    # --- specs: N-tile (j) outer so the weight block stays resident across the
    #     inner M sweep; weight/bias single-buffered when grid-invariant. ---
    invariant = (nj == 1)
    x_spec = pl.BlockSpec((tm, K_pad), lambda j, i: (i, 0))
    w_spec = _spec((K_pad, tn), lambda j, i: (0, j), single_buffer=invariant)
    b_spec = _spec((1, tn), lambda j, i: (0, j), single_buffer=invariant)
    o_spec = pl.BlockSpec((tm, tn), lambda j, i: (i, j))

    # --- VMEM budget: double-buffered x/out tiles + weight + bias, 2x headroom,
    #     capped at 32 MiB so v7x (64 MiB physical) keeps scratch headroom. ---
    vmem_need = (2 * tm * K_pad * in_b + 2 * tm * tn * out_b
                 + 2 * K_pad * tn * in_b + 2 * tn * 4)
    vmem_limit = int(min(max(2 * vmem_need, 4 << 20), 32 << 20))

    extra = {}
    if hasattr(pl, "CostEstimate"):
        extra["cost_estimate"] = pl.CostEstimate(
            flops=2 * M8 * K_pad * N_pad,
            transcendentals=0,
            bytes_accessed=(M8 * K_pad * in_b + K_pad * N_pad * in_b
                            + N_pad * 4 + M8 * N_pad * out_b),
        )

    out = pl.pallas_call(
        _proj_kernel,
        out_shape=jax.ShapeDtypeStruct((M8, N_pad), out_dtype),
        grid_spec=pltpu.PrefetchScalarGridSpec(
            num_scalar_prefetch=0,
            grid=(nj, ni),
            in_specs=[x_spec, w_spec, b_spec],
            out_specs=o_spec,
        ),
        compiler_params=_CompilerParams(
            dimension_semantics=("parallel", "parallel"),
            vmem_limit_bytes=vmem_limit,
        ),
        **extra,
    )(xp, wt, bf)

    if M8 != M or N_pad != N:
        out = out[:M, :N]
    return out.reshape(B, num_patches, N)


if __name__ == "__main__":
    # Small config consistent with the module: img_size=16, patch_size=4,
    # in_channels=3, embed_dim=32.
    B, C, H, W = 2, 3, 16, 16
    p = 4
    embed_dim = 32
    K = C * p * p                       # 48
    num_patches = (H // p) * (W // p)   # 16

    key = jax.random.PRNGKey(0)
    kx, kw, kb = jax.random.split(key, 3)
    x = jax.random.normal(kx, (B, C, H, W), dtype=jnp.float32)
    # PyTorch nn.Linear parameter layout: weight (embed_dim, K), bias (embed_dim,)
    weight = jax.random.normal(kw, (embed_dim, K), dtype=jnp.float32) * 0.02
    bias = jax.random.normal(kb, (embed_dim,), dtype=jnp.float32) * 0.02

    y = patch_embed_pallas(x, weight, bias, p)
    y = jax.block_until_ready(y)
    assert y.shape == (B, num_patches, embed_dim), y.shape
    y32 = y.astype(jnp.float32)

    # references (plain JAX, PyTorch forward semantics)
    xr = x.reshape(B, C, H // p, p, W // p, p).transpose(0, 2, 4, 1, 3, 5)
    xr = xr.reshape(B, num_patches, K)
    y_ref = xr @ weight.T + bias                                   # full f32

    # matched-quantization reference (bf16 inputs, f32 accum, bf16 store)
    xq = xr.astype(jnp.bfloat16).astype(jnp.float32)
    wq = weight.T.astype(jnp.bfloat16).astype(jnp.float32)
    y_ref_q = (xq @ wq + bias).astype(jnp.bfloat16).astype(jnp.float32)

    err_q = float(jnp.max(jnp.abs(y32 - y_ref_q)))
    assert jnp.allclose(y32, y_ref_q, atol=3e-2, rtol=3e-2), err_q
    err_f = float(jnp.max(jnp.abs(y32 - y_ref)))
    assert jnp.allclose(y32, y_ref, atol=6e-2, rtol=6e-2), err_f

    print("KERNEL_OK")
</pallas_src>

<mosaic_0001>
module attributes {stable_mosaic.version = 11 : i64} {
  func.func @_proj_kernel(%arg0: i32, %arg1: i32, %arg2: memref<16x128xbf16, #tpu.memory_space<vmem>>, %arg3: memref<128x128xbf16, #tpu.memory_space<vmem>>, %arg4: memref<1x128xf32, #tpu.memory_space<vmem>>, %arg5: memref<16x128xbf16, #tpu.memory_space<vmem>>) attributes {dimension_semantics = [#tpu.dimension_semantics<parallel>, #tpu.dimension_semantics<parallel>], iteration_bounds = array<i64: 1, 2>, scalar_prefetch = 0 : i64, scratch_operands = 0 : i64, tpu.core_type = #tpu.core_type<tc>, window_params = [{transform_indices = @transform_0, window_bounds = array<i64: 16, 128>}, {pipeline_mode = #tpu.pipeline_mode<synchronous>, transform_indices = @transform_1, window_bounds = array<i64: 128, 128>}, {pipeline_mode = #tpu.pipeline_mode<synchronous>, transform_indices = @transform_2, window_bounds = array<i64: 1, 128>}, {transform_indices = @transform_3, window_bounds = array<i64: 16, 128>}]} {
    %c0 = arith.constant 0 : index
    %c0_0 = arith.constant 0 : index
    %0 = vector.load %arg2[%c0, %c0_0] : memref<16x128xbf16, #tpu.memory_space<vmem>>, vector<16x128xbf16>
    %c0_1 = arith.constant 0 : index
    %c0_2 = arith.constant 0 : index
    %1 = vector.load %arg3[%c0_1, %c0_2] : memref<128x128xbf16, #tpu.memory_space<vmem>>, vector<128x128xbf16>
    %cst = arith.constant dense<0.000000e+00> : vector<16x128xf32>
    %2 = tpu.matmul %0, %1, %cst {dimension_numbers = #tpu.dot_dimension_numbers<[1], [0], [0], [1], [0, 0, 1, 1], [], []>} : vector<16x128xbf16>, vector<128x128xbf16>, vector<16x128xf32> -> vector<16x128xf32>
    %c0_3 = arith.constant 0 : index
    %c0_4 = arith.constant 0 : index
    %3 = vector.load %arg4[%c0_3, %c0_4] : memref<1x128xf32, #tpu.memory_space<vmem>>, vector<1x128xf32>
    %4 = vector.broadcast %3 : vector<1x128xf32> to vector<16x128xf32>
    %5 = arith.addf %2, %4 : vector<16x128xf32>
    %6 = arith.truncf %5 : vector<16x128xf32> to vector<16x128xbf16>
    %c0_5 = arith.constant 0 : index
    %c0_6 = arith.constant 0 : index
    %7 = vector.load %arg5[%c0_5, %c0_6] : memref<16x128xbf16, #tpu.memory_space<vmem>>, vector<16x128xbf16>
    tpu.vector_store %arg5[%c0_5, %c0_6], %6 {strides = array<i32>} : memref<16x128xbf16, #tpu.memory_space<vmem>>, vector<16x128xbf16>,
    return
  }
  func.func @transform_0(%arg0: i32, %arg1: i32) -> (i32, i32) {
    %c0_i32 = arith.constant 0 : i32
    %c0_i32_0 = arith.constant 0 : i32
    return %arg1, %c0_i32 : i32, i32
  }
  func.func @transform_1(%arg0: i32, %arg1: i32) -> (i32, i32) {
    %c0_i32 = arith.constant 0 : i32
    %c0_i32_0 = arith.constant 0 : i32
    return %c0_i32, %arg0 : i32, i32
  }
  func.func @transform_2(%arg0: i32, %arg1: i32) -> (i32, i32) {
    %c0_i32 = arith.constant 0 : i32
    %c0_i32_0 = arith.constant 0 : i32
    return %c0_i32, %arg0 : i32, i32
  }
  func.func @transform_3(%arg0: i32, %arg1: i32) -> (i32, i32) {
    %c0_i32 = arith.constant 0 : i32
    return %arg1, %arg0 : i32, i32
  }
}

</mosaic_0001>

<bundles_post_ra>
// kernel: patch_embed_pallas.1
= control target key start
LH: loop header
LB: loop body
LE: loop exit
PB: predicated region body
PF: predicated region fallthrough
CT: control target
= control target key end

     0   :  { %8 = vsyncpa [#allocation3], 0  ;;  %s840_s0 = inlined_call_operand.vmem [shape: bf16[32,128], index: 0, kind: input, shape index: {}]   ;;  %s841_s1 = inlined_call_operand.vmem [shape: bf16[128,128], index: 1, kind: input, shape index: {}]   ;;  %s842_s2 = inlined_call_operand.vmem [shape: f32[1,128], index: 2, kind: input, shape index: {}]   ;;  %s843_s3 = inlined_call_operand.hbm [shape: bf16[32,128], index: 3, kind: output, shape index: {}]  }
   0x1   :  { %10 = vsyncpa [#allocation3 + $0x1], 0  ;;  %s699_s12 = smov 0   ;;  %s701_s13 = smov 0  }
   0x2   :  { %s703_s14 = smov 0   ;;  %s705_s15 = smov 0  }
   0x3   :  { %s707_s16 = smov 0   ;;  %s709_s17 = smov 0  }
   0x4 LB: > { %s462_s18 = sadd.s32 4294967295, %s672_s17   ;;  %s463_s19 = sadd.s32 4294967294, %s672_s17   ;;  %s672_s17 = sphi %s709_s17, %s16_s17   ;;  %s668_s16 = sphi %s707_s16, %s850_s16   ;;  %s664_s15 = sphi %s705_s15, %s849_s15   ;;  %s660_s14 = sphi %s703_s14, %s848_s14   ;;  %s656_s13 = sphi %s701_s13, %s847_s13   ;;  %s652_s12 = sphi %s699_s12, %s846_s12  }
   0x5   : > { %s25_s20 = sadd.s32 1, %s668_s16  ;;  %s115_s21 = sadd.s32 1, %s660_s14 }
   0x6   : > { %p26_p0 = scmp.ge.s32.totalorder %s25_s20, 2  ;;  %p125_p1 = scmp.ne.s32.totalorder %s660_s14, %s656_s13 }
   0x7   : > { %p126_p2 = scmp.eq.s32.totalorder %s462_s18, 1  ;;  %p131_p3 = scmp.ne.s32.totalorder %s656_s13, %s652_s12 }
   0x8   : > { %s852_s20 = smov (%p26_p0, %s25_s20), 0  ;;  %p132_p5 = scmp.eq.s32.totalorder %s463_s19, 1 }
   0x9   : > { %p739_p4 = por %p126_p2, %p125_p1  ;;  %s110_s23 = ssub.s32 %s668_s16, %s852_s20 }
   0xa   : > { %p468_p6 = scmp.ge.s32.totalorder %s672_s17, 1  ;;  %p113_p7 = scmp.eq.s32.totalorder %s110_s23, 0 }
   0xb   : > { %p746_p8 = por %p132_p5, %p131_p3  ;;  %p172_p9 = scmp.lt.s32.totalorder %s672_s17, 3 }
   0xc   : > { %s752_s25 = scalar_select %p113_p7, %s660_s14, %s115_s21  }
   0xd   : > { %p173_p10 = pnand %p468_p6, %p172_p9 }
   0xe   : > { %v585_v0 = vld [vmem:[%s841_s1] sm:$0xff] (!%p173_p10)   ;;  %v674_v1 = vmov (!%p173_p10), 0.0   ;;  %v586_v2 = vld [vmem:[%s841_s1 + $0x8] sm:$0xff] (!%p173_p10)   ;;  %vm675_vm0 = vmmov (!%p173_p10), 0   ;;  %s470_s30 = sshll.u32 (!%p173_p10), %s664_s15, 1  ;;  %v587_v3 = vld [vmem:[%s841_s1 + $0x10] sm:$0xff] (!%p173_p10)  }
   0xf   : > { %176 = sbr.rel (%p173_p10) target bundleno = 280 (0x118), region = 32  ;;  %506 = vmatprep.subr.bf16.mxu0 (!%p173_p10), %v674_v1  ;;  %522 = vmatprep.mubr.msk.bf16.mxu0 (!%p173_p10), %vm675_vm0, %v674_v1  ;;  %p204_p11 = scmp.lt.s32.totalorder (!%p173_p10), %s470_s30, 3  ;;  %v588_v4 = vld [vmem:[%s841_s1 + $0x18] sm:$0xff] (!%p173_p10)   ;;  %v589_v5 = vld [vmem:[%s841_s1 + $0x20] sm:$0xff] (!%p173_p10)   ;;  %v590_v6 = vld [vmem:[%s841_s1 + $0x28] sm:$0xff] (!%p173_p10)  }
  0x10   : > { %507 = vmatpush3.bf16.msra.mxu0 (!%p173_p10), %v585_v0  ;;  %v591_v7 = vld [vmem:[%s841_s1 + $0x30] sm:$0xff] (!%p173_p10)   ;;  %v592_v8 = vld [vmem:[%s841_s1 + $0x38] sm:$0xff] (!%p173_p10)   ;;  %v472_v10 = vld [vmem:[%s842_s2] ss:$0 sm:$0xff] (!%p173_p10)  ;;  %s491_s10 = sshll.u32 (!%p173_p10), %s664_s15, 7  ;;  %s676_s15 = smov (!%p173_p10), [#allocation2]  }
  0x11   : > { %508 = vmatprep.subr.bf16.mxu0 (!%p173_p10), %v674_v1  ;;  %s792_s18 = scalar_lea.hbm (!%p173_p10), %s843_s3, %s491_s10  ;;  %s598_s23 = sshll.u32 (!%p173_p10), %s676_s15, 4  ;;  %s599_s23 = int_to_ptr.vmem [resolvable:$false] %s598_s23 }
  0x12   : > { %s600_s26 = scalar_lea.vmem (!%p173_p10), %s599_s23, 256 }
  0x14   : > { %509 = vmatpush3.bf16.msra.mxu0 (!%p173_p10), %v586_v2 }
  0x15   : > { %510 = vmatprep.subr.bf16.mxu0 (!%p173_p10), %v674_v1 }
  0x16   : > { %s854_s30 = smov (!%p204_p11, %s470_s30), 3 }
  0x17   : > { %s471_s6 = sshll.u32 %s854_s30, 2  ;;  %s200_s30 = sand.u32 1, %s656_s13  }
  0x18   : > { %s207_s9 = scalar_lea.vmem %s840_s0, %s471_s6  ;;  %511 = vmatpush3.bf16.msra.mxu0 %v587_v3  ;;  %s469_s4 = sshll.u32 %s200_s30, 3 }
  0x19   : > { %512 = vmatprep.subr.bf16.mxu0 %v674_v1  ;;  %v593_v9 = vld [vmem:[%s207_s9] sm:$0xff]   ;;  %s202_s7 = scalar_lea.vmem [#allocation2], %s469_s4  ;;  %s794_s19 = scalar_lea.sflag [#allocation3], %s200_s30 }
  0x1a   : > { %s363_s8 = sshll.u32 %s202_s7, 4  ;;  %s787_s8 = int_to_ptr.vmem [resolvable:$true] %s363_s8 }
  0x1b   : > { %s594_s21 = scalar_lea.vmem %s787_s8, 128  ;;  %p601_p1 = scmp.lt.s32.totalorder %s787_s8, %s599_s23 }
  0x1c   : > { %513 = vmatpush3.bf16.msra.mxu0 %v588_v4  ;;  %p595_p12 = scmp.ne.s32.totalorder %s787_s8, %s594_s21  ;;  %p602_p2 = scmp.lt.s32.totalorder %s600_s26, %s594_s21 }
  0x1d   : > { %514 = vmatprep.subr.bf16.mxu0 %v674_v1 }
  0x1e   : > { %p596_p13 = pnand %p595_p12, %p739_p4  ;;  %p603_p3 = por %p602_p2, %p601_p1 }
  0x20   : > { %515 = vmatpush3.bf16.msra.mxu0 %v589_v5  ;;  %p597_p0 = pneg %p596_p13 }
  0x21   : > { %516 = vmatprep.subr.bf16.mxu0 %v674_v1 }
  0x22   : > { %p604_p5 = pnand %p603_p3, %p597_p0 }
  0x24   : > { %517 = vmatpush3.bf16.msra.mxu0 %v590_v6 }
  0x25   : > { %518 = vmatprep.subr.bf16.mxu0 %v674_v1 }
  0x28   : > { %519 = vmatpush3.bf16.msra.mxu0 %v591_v7 }
  0x29   : > { %520 = vmatprep.subr.bf16.mxu0 %v674_v1 }
  0x2c   : > { %521 = vmatpush3.bf16.msra.mxu0 %v592_v8 }
  0x2f   : > { %523 = vmatmul.mubr.bf16.vlgmr.msra.gmra.mrb[0].mxu0 %v593_v9 }
 0x102   : > { %v331_v11 = vpop.f32.mrb[0].mxu0 }
 0x103   : > { %v524_v12 = vpop.f32.mrb[1].mxu0  ;;  %v332_v14 = vadd.f32 %v472_v10, %v331_v11 }
 0x104   : > { %v334_v13 = vpop.f32.mrb[2].mxu0 }
 0x105   : > { %v335_v15 = vadd.f32 %v472_v10, %v334_v13  ;;  %v525_v16 = vpop.f32.mrb[3].mxu0 }
 0x107   : > { %v495_v17 = vpack.c.bf16 %v335_v15, %v332_v14 }
 0x109   : > { %496 = vst [vmem:[%s202_s7] sm:$0xff] %v495_v17  }
 0x10a   : > { %607 = shalt.err (!%p604_p5)
}
 0x10b   : > { %s608_s27 = scalar_lea.hbm %s792_s18, 128  ;;  %s612_s30 = scalar_lea.hbm %s843_s3, 256 }
 0x10c   : > { %p609_p6 = scmp.ne.s32.totalorder %s792_s18, %s608_s27  ;;  %p613_p10 = scmp.lt.u32.totalorder %s792_s18, %s843_s3 }
 0x10d   : > { %p614_p11 = scmp.lt.u32.totalorder %s612_s30, %s608_s27  ;;  %p616_p13 = scmp.lt.u32.totalorder %s608_s27, %s792_s18 }
 0x10e   : > { %p610_p7 = pnand %p609_p6, %p739_p4 }
 0x10f   : > { %p615_p12 = por %p614_p11, %p613_p10 }
 0x110   : > { %p611_p9 = pneg %p610_p7 }
 0x111   : > { %p617_p0 = por %p616_p13, %p615_p12 }
 0x113   : > { %p618_p1 = pnand %p617_p0, %p611_p9 }
 0x115   : > { %621 = shalt.err (!%p618_p1)
}
 0x116   : > { %s677_s6 = smov 64   ;;  %s678_s7 = smov 4  }
 0x117   : > { %526 = dma.vmem_to_hbm [thread:$0]  (%p739_p4), %s787_s8, 128, %s792_s18, %s794_s19, %s677_s6, %s677_s6, %s678_s7  }
 0x118 PF: > { %p532_p2 = scmp.ge.s32.totalorder %s672_s17, 2  ;;  %s378_s10 = sand.u32 1, %s652_s12  }
 0x119   : > { %s379_s9 = scalar_lea.sflag [#allocation3], %s378_s10 }
 0x11a   : > { %p529_p3 = pnand %p532_p2, %p746_p8 }
 0x11c   : > { %647 = dma.done.wait (!%p529_p3), %s379_s9, 128  }
 0x11d   : > { %649 = vsyncadd (!%p529_p3), %s379_s9, 4294967168  ;;  %s16_s17 = sadd.s32 1, %s672_s17   ;;  %s846_s12 = smov %s656_s13 }
 0x11e   : > { %p13_p5 = scmp.ge.s32.totalorder %s16_s17, 4   ;;  %s847_s13 = smov %s660_s14 }
 0x11f   : > { %s848_s14 = smov %s752_s25  ;;  %s849_s15 = smov %s668_s16 }
 0x120   : > { %s850_s16 = smov %s852_s20  ;;  %15 = sbr.rel (!%p13_p5) target bundleno = 4 (0x4), region = 73 }
 0x127   :  { %384 = vsyncpa [#allocation3], 1 }
 0x128   :  { %386 = vsyncpa [#allocation3 + $0x1], 1 }

</bundles_post_ra>
